<compile_context>
chip_gen: v7x
topology: tpu7x:2x2x1
jax: 0.10.0
libtpu: 0.0.40
codegen_flags: <defaults>
</compile_context>

<pallas_src>
import functools

import jax
import jax.numpy as jnp
from jax.experimental import pallas as pl
from jax.experimental.pallas import tpu as pltpu


_LANE = 128  # TPU lane width; Chebyshev-order axis is processed in 128-wide chunks.


def _round_up(a: int, b: int) -> int:
    return (a + b - 1) // b * b


def _chebyshev_kernel(ids_ref, out_ref, *, max_seq_len: int, n_chunks: int):
    """One row tile: out[r, k] = T_k(x_r), k lane-dense in chunks of 128."""
    rows = out_ref.shape[0]

    # ---- normalize ids into the Chebyshev domain [-1, 1] -------------------
    x = ids_ref[...]                                         # (R, 1) f32
    denom = jnp.float32(max(max_seq_len - 1, 1))
    x = jnp.clip(2.0 * x / denom - 1.0, -1.0, 1.0)           # x = cos(theta)
    s = jnp.sqrt(jnp.maximum(1.0 - x * x, 0.0))              # sin(theta) >= 0

    lane = jax.lax.broadcasted_iota(jnp.int32, (rows, _LANE), 1)

    # ---- seed chunk: C[:, j] = cos(j*theta) = T_j(x), j = 0..127 -----------
    # log2(128) angle-doubling steps; each step fills the next power-of-two
    # block of lanes with one roll + a few VPU ops (no transcendentals,
    # no narrow per-column stores).
    C = jnp.where(lane == 0, 1.0, x)                         # [1, cos t, ...]
    S = jnp.where(lane == 0, 0.0, s)                         # [0, sin t, ...]
    cc = 2.0 * x * x - 1.0                                   # cos(2 theta) (R,1)
    ss = 2.0 * s * x                                         # sin(2 theta) (R,1)
    w = 2
    while w < _LANE:                                         # 6 static steps
        new_c = cc * C - ss * S                              # cos((w+j) theta)
        new_s = ss * C + cc * S                              # sin((w+j) theta)
        new_c = pltpu.roll(new_c, shift=w, axis=1)
        new_s = pltpu.roll(new_s, shift=w, axis=1)
        C = jnp.where(lane < w, C, new_c)
        S = jnp.where(lane < w, S, new_s)
        cc, ss = 2.0 * cc * cc - 1.0, 2.0 * ss * cc          # angle doubling
        w *= 2
    # Now C[:, j] = T_j(x) for j < 128, and cc = cos(128*theta) = T_128(x).

    out_ref[:, 0:_LANE] = C                                  # chunk 0 (lane-dense store)

    # ---- higher chunks: three-term recurrence across 128-wide chunks -------
    if n_chunks >= 2:
        c1 = cc * C - ss * S                                 # T_{128+j}
        out_ref[:, _LANE:2 * _LANE] = c1
        two_t = jnp.broadcast_to(2.0 * cc, (rows, _LANE))    # hoisted broadcast
        prev2, prev1 = C, c1
        for c in range(2, n_chunks):                         # static unroll, O(1) live tiles
            nxt = two_t * prev1 - prev2                      # T_{c*128+j}
            out_ref[:, c * _LANE:(c + 1) * _LANE] = nxt
            prev2, prev1 = prev1, nxt


def chebyshev_block(input_ids: jax.Array, max_seq_len: int, d_model: int) -> jax.Array:
    """Pallas equivalent of ChebyshevBlock.forward: (B, S) ids -> (B, S, d_model) f32."""
    B, S = input_ids.shape
    N = B * S
    ids = input_ids.astype(jnp.float32).reshape(N, 1)        # mirrors input_ids.float()

    d_pad = _round_up(max(d_model, 1), _LANE)
    n_chunks = d_pad // _LANE

    # Row tile: multiple of 8, large enough to amortize per-step overhead,
    # small enough that the double-buffered output block stays well inside
    # the scoped-VMEM defaults on v5e / v6e / v7x.
    max_rows_by_vmem = max(8, ((8 << 20) // (d_pad * 4)) // 8 * 8)
    tile_rows = min(512, max_rows_by_vmem)
    if N < tile_rows:
        tile_rows = max(8, _round_up(N, 8))
    n_pad = _round_up(N, tile_rows)
    if n_pad != N:
        ids = jnp.pad(ids, ((0, n_pad - N), (0, 0)))

    kernel = functools.partial(
        _chebyshev_kernel, max_seq_len=max_seq_len, n_chunks=n_chunks
    )

    out = pl.pallas_call(
        kernel,
        out_shape=jax.ShapeDtypeStruct((n_pad, d_pad), jnp.float32),
        grid=(n_pad // tile_rows,),
        in_specs=[pl.BlockSpec((tile_rows, 1), lambda i: (i, 0))],
        out_specs=pl.BlockSpec((tile_rows, d_pad), lambda i: (i, 0)),
        compiler_params=pltpu.CompilerParams(
            dimension_semantics=("parallel",),   # rows are independent -> both TCs on v7x
        ),
    )(ids)

    if n_pad != N or d_pad != d_model:
        out = out[:N, :d_model]
    return out.reshape(B, S, d_model)


def _reference(input_ids, max_seq_len, d_model):
    """Pure-JAX three-term-recurrence reference."""
    x = input_ids.astype(jnp.float32)
    x = jnp.clip(2.0 * x / max(max_seq_len - 1, 1) - 1.0, -1.0, 1.0)
    cols = [jnp.ones_like(x)]
    if d_model > 1:
        cols.append(x)
        for _ in range(2, d_model):
            cols.append(2.0 * x * cols[-1] - cols[-2])
    return jnp.stack(cols, axis=-1)


if __name__ == "__main__":
    key = jax.random.PRNGKey(0)
    k1, k2 = jax.random.split(key)

    # --- test 1: small module-like shapes (single chunk, single grid step) ---
    MAX_SEQ_LEN, D_MODEL, B, S = 16, 32, 2, 8
    ids = jax.random.randint(k1, (B, S), 0, MAX_SEQ_LEN, dtype=jnp.int32)
    out = jax.block_until_ready(chebyshev_block(ids, MAX_SEQ_LEN, D_MODEL))
    ref = _reference(ids, MAX_SEQ_LEN, D_MODEL)
    assert out.shape == (B, S, D_MODEL) and out.dtype == jnp.float32
    assert jnp.allclose(out, ref, atol=1e-4, rtol=1e-4), "mismatch vs reference (test 1)"

    # --- test 2: multi-chunk d_model, padded rows, multi-step grid ----------
    # ids kept away from the extremes so both f32 recurrences stay well
    # conditioned and the comparison tolerance can remain tight.
    MAX_SEQ_LEN2, D_MODEL2, B2, S2 = 512, 300, 5, 200
    ids2 = jax.random.randint(k2, (B2, S2), 32, 480, dtype=jnp.int32)
    out2 = jax.block_until_ready(chebyshev_block(ids2, MAX_SEQ_LEN2, D_MODEL2))
    ref2 = _reference(ids2, MAX_SEQ_LEN2, D_MODEL2)
    assert out2.shape == (B2, S2, D_MODEL2) and out2.dtype == jnp.float32
    assert jnp.allclose(out2, ref2, atol=5e-4, rtol=0), "mismatch vs reference (test 2)"

    print("KERNEL_OK")
</pallas_src>

<mosaic_0001>
module attributes {stable_mosaic.version = 11 : i64} {
  func.func @_chebyshev_kernel(%arg0: i32, %arg1: memref<16x1xf32, #tpu.memory_space<vmem>>, %arg2: memref<16x128xf32, #tpu.memory_space<vmem>>) attributes {dimension_semantics = [#tpu.dimension_semantics<parallel>], iteration_bounds = array<i64: 1>, scalar_prefetch = 0 : i64, scratch_operands = 0 : i64, tpu.core_type = #tpu.core_type<tc>, window_params = [{transform_indices = @transform_0, window_bounds = array<i64: 16, 1>}, {transform_indices = @transform_1, window_bounds = array<i64: 16, 128>}]} {
    %c0 = arith.constant 0 : index
    %c0_0 = arith.constant 0 : index
    %0 = vector.load %arg1[%c0, %c0_0] : memref<16x1xf32, #tpu.memory_space<vmem>>, vector<16x1xf32>
    %cst = arith.constant 2.000000e+00 : f32
    %1 = vector.broadcast %cst : f32 to vector<16x1xf32>
    %2 = arith.mulf %1, %0 : vector<16x1xf32>
    %cst_1 = arith.constant 1.500000e+01 : f32
    %3 = vector.broadcast %cst_1 : f32 to vector<16x1xf32>
    %4 = arith.divf %2, %3 : vector<16x1xf32>
    %cst_2 = arith.constant 1.000000e+00 : f32
    %5 = vector.broadcast %cst_2 : f32 to vector<16x1xf32>
    %6 = arith.subf %4, %5 : vector<16x1xf32>
    %cst_3 = arith.constant -1.000000e+00 : f32
    %cst_4 = arith.constant 1.000000e+00 : f32
    %7 = vector.broadcast %cst_3 : f32 to vector<16x1xf32>
    %8 = arith.maximumf %7, %6 : vector<16x1xf32>
    %9 = vector.broadcast %cst_4 : f32 to vector<16x1xf32>
    %10 = arith.minimumf %9, %8 : vector<16x1xf32>
    %11 = arith.mulf %10, %10 : vector<16x1xf32>
    %cst_5 = arith.constant 1.000000e+00 : f32
    %12 = vector.broadcast %cst_5 : f32 to vector<16x1xf32>
    %13 = arith.subf %12, %11 : vector<16x1xf32>
    %cst_6 = arith.constant 0.000000e+00 : f32
    %14 = vector.broadcast %cst_6 : f32 to vector<16x1xf32>
    %15 = arith.maximumf %13, %14 : vector<16x1xf32>
    %16 = math.sqrt %15 : vector<16x1xf32>
    %17 = tpu.iota {dimensions = array<i32: 1>} : vector<16x128xi32>
    %c0_i32 = arith.constant 0 : i32
    %18 = vector.broadcast %c0_i32 : i32 to vector<16x128xi32>
    %19 = arith.cmpi eq, %17, %18 : vector<16x128xi32>
    %cst_7 = arith.constant 1.000000e+00 : f32
    %20 = vector.broadcast %cst_7 : f32 to vector<16x128xf32>
    %21 = vector.shape_cast %10 : vector<16x1xf32> to vector<16x1xf32>
    %22 = vector.broadcast %21 : vector<16x1xf32> to vector<16x128xf32>
    %23 = arith.select %19, %20, %22 : vector<16x128xi1>, vector<16x128xf32>
    %c0_i32_8 = arith.constant 0 : i32
    %24 = vector.broadcast %c0_i32_8 : i32 to vector<16x128xi32>
    %25 = arith.cmpi eq, %17, %24 : vector<16x128xi32>
    %cst_9 = arith.constant 0.000000e+00 : f32
    %26 = vector.broadcast %cst_9 : f32 to vector<16x128xf32>
    %27 = vector.shape_cast %16 : vector<16x1xf32> to vector<16x1xf32>
    %28 = vector.broadcast %27 : vector<16x1xf32> to vector<16x128xf32>
    %29 = arith.select %25, %26, %28 : vector<16x128xi1>, vector<16x128xf32>
    %cst_10 = arith.constant 2.000000e+00 : f32
    %30 = vector.broadcast %cst_10 : f32 to vector<16x1xf32>
    %31 = arith.mulf %30, %10 : vector<16x1xf32>
    %32 = arith.mulf %31, %10 : vector<16x1xf32>
    %cst_11 = arith.constant 1.000000e+00 : f32
    %33 = vector.broadcast %cst_11 : f32 to vector<16x1xf32>
    %34 = arith.subf %32, %33 : vector<16x1xf32>
    %cst_12 = arith.constant 2.000000e+00 : f32
    %35 = vector.broadcast %cst_12 : f32 to vector<16x1xf32>
    %36 = arith.mulf %35, %16 : vector<16x1xf32>
    %37 = arith.mulf %36, %10 : vector<16x1xf32>
    %38 = vector.broadcast %34 : vector<16x1xf32> to vector<16x128xf32>
    %39 = arith.mulf %38, %23 : vector<16x128xf32>
    %40 = vector.broadcast %37 : vector<16x1xf32> to vector<16x128xf32>
    %41 = arith.mulf %40, %29 : vector<16x128xf32>
    %42 = arith.subf %39, %41 : vector<16x128xf32>
    %43 = vector.broadcast %37 : vector<16x1xf32> to vector<16x128xf32>
    %44 = arith.mulf %43, %23 : vector<16x128xf32>
    %45 = vector.broadcast %34 : vector<16x1xf32> to vector<16x128xf32>
    %46 = arith.mulf %45, %29 : vector<16x128xf32>
    %47 = arith.addf %44, %46 : vector<16x128xf32>
    %c2_i32 = arith.constant 2 : i32
    %48 = tpu.dynamic_rotate %42 by %c2_i32 dim 1 : vector<16x128xf32>, i32 -> vector<16x128xf32>
    %c2_i32_13 = arith.constant 2 : i32
    %49 = tpu.dynamic_rotate %47 by %c2_i32_13 dim 1 : vector<16x128xf32>, i32 -> vector<16x128xf32>
    %c2_i32_14 = arith.constant 2 : i32
    %50 = vector.broadcast %c2_i32_14 : i32 to vector<16x128xi32>
    %51 = arith.cmpi slt, %17, %50 : vector<16x128xi32>
    %52 = arith.select %51, %23, %48 : vector<16x128xi1>, vector<16x128xf32>
    %c2_i32_15 = arith.constant 2 : i32
    %53 = vector.broadcast %c2_i32_15 : i32 to vector<16x128xi32>
    %54 = arith.cmpi slt, %17, %53 : vector<16x128xi32>
    %55 = arith.select %54, %29, %49 : vector<16x128xi1>, vector<16x128xf32>
    %cst_16 = arith.constant 2.000000e+00 : f32
    %56 = vector.broadcast %cst_16 : f32 to vector<16x1xf32>
    %57 = arith.mulf %56, %34 : vector<16x1xf32>
    %58 = arith.mulf %57, %34 : vector<16x1xf32>
    %cst_17 = arith.constant 1.000000e+00 : f32
    %59 = vector.broadcast %cst_17 : f32 to vector<16x1xf32>
    %60 = arith.subf %58, %59 : vector<16x1xf32>
    %cst_18 = arith.constant 2.000000e+00 : f32
    %61 = vector.broadcast %cst_18 : f32 to vector<16x1xf32>
    %62 = arith.mulf %61, %37 : vector<16x1xf32>
    %63 = arith.mulf %62, %34 : vector<16x1xf32>
    %64 = vector.broadcast %60 : vector<16x1xf32> to vector<16x128xf32>
    %65 = arith.mulf %64, %52 : vector<16x128xf32>
    %66 = vector.broadcast %63 : vector<16x1xf32> to vector<16x128xf32>
    %67 = arith.mulf %66, %55 : vector<16x128xf32>
    %68 = arith.subf %65, %67 : vector<16x128xf32>
    %69 = vector.broadcast %63 : vector<16x1xf32> to vector<16x128xf32>
    %70 = arith.mulf %69, %52 : vector<16x128xf32>
    %71 = vector.broadcast %60 : vector<16x1xf32> to vector<16x128xf32>
    %72 = arith.mulf %71, %55 : vector<16x128xf32>
    %73 = arith.addf %70, %72 : vector<16x128xf32>
    %c4_i32 = arith.constant 4 : i32
    %74 = tpu.dynamic_rotate %68 by %c4_i32 dim 1 : vector<16x128xf32>, i32 -> vector<16x128xf32>
    %c4_i32_19 = arith.constant 4 : i32
    %75 = tpu.dynamic_rotate %73 by %c4_i32_19 dim 1 : vector<16x128xf32>, i32 -> vector<16x128xf32>
    %c4_i32_20 = arith.constant 4 : i32
    %76 = vector.broadcast %c4_i32_20 : i32 to vector<16x128xi32>
    %77 = arith.cmpi slt, %17, %76 : vector<16x128xi32>
    %78 = arith.select %77, %52, %74 : vector<16x128xi1>, vector<16x128xf32>
    %c4_i32_21 = arith.constant 4 : i32
    %79 = vector.broadcast %c4_i32_21 : i32 to vector<16x128xi32>
    %80 = arith.cmpi slt, %17, %79 : vector<16x128xi32>
    %81 = arith.select %80, %55, %75 : vector<16x128xi1>, vector<16x128xf32>
    %cst_22 = arith.constant 2.000000e+00 : f32
    %82 = vector.broadcast %cst_22 : f32 to vector<16x1xf32>
    %83 = arith.mulf %82, %60 : vector<16x1xf32>
    %84 = arith.mulf %83, %60 : vector<16x1xf32>
    %cst_23 = arith.constant 1.000000e+00 : f32
    %85 = vector.broadcast %cst_23 : f32 to vector<16x1xf32>
    %86 = arith.subf %84, %85 : vector<16x1xf32>
    %cst_24 = arith.constant 2.000000e+00 : f32
    %87 = vector.broadcast %cst_24 : f32 to vector<16x1xf32>
    %88 = arith.mulf %87, %63 : vector<16x1xf32>
    %89 = arith.mulf %88, %60 : vector<16x1xf32>
    %90 = vector.broadcast %86 : vector<16x1xf32> to vector<16x128xf32>
    %91 = arith.mulf %90, %78 : vector<16x128xf32>
    %92 = vector.broadcast %89 : vector<16x1xf32> to vector<16x128xf32>
    %93 = arith.mulf %92, %81 : vector<16x128xf32>
    %94 = arith.subf %91, %93 : vector<16x128xf32>
    %95 = vector.broadcast %89 : vector<16x1xf32> to vector<16x128xf32>
    %96 = arith.mulf %95, %78 : vector<16x128xf32>
    %97 = vector.broadcast %86 : vector<16x1xf32> to vector<16x128xf32>
    %98 = arith.mulf %97, %81 : vector<16x128xf32>
    %99 = arith.addf %96, %98 : vector<16x128xf32>
    %c8_i32 = arith.constant 8 : i32
    %100 = tpu.dynamic_rotate %94 by %c8_i32 dim 1 : vector<16x128xf32>, i32 -> vector<16x128xf32>
    %c8_i32_25 = arith.constant 8 : i32
    %101 = tpu.dynamic_rotate %99 by %c8_i32_25 dim 1 : vector<16x128xf32>, i32 -> vector<16x128xf32>
    %c8_i32_26 = arith.constant 8 : i32
    %102 = vector.broadcast %c8_i32_26 : i32 to vector<16x128xi32>
    %103 = arith.cmpi slt, %17, %102 : vector<16x128xi32>
    %104 = arith.select %103, %78, %100 : vector<16x128xi1>, vector<16x128xf32>
    %c8_i32_27 = arith.constant 8 : i32
    %105 = vector.broadcast %c8_i32_27 : i32 to vector<16x128xi32>
    %106 = arith.cmpi slt, %17, %105 : vector<16x128xi32>
    %107 = arith.select %106, %81, %101 : vector<16x128xi1>, vector<16x128xf32>
    %cst_28 = arith.constant 2.000000e+00 : f32
    %108 = vector.broadcast %cst_28 : f32 to vector<16x1xf32>
    %109 = arith.mulf %108, %86 : vector<16x1xf32>
    %110 = arith.mulf %109, %86 : vector<16x1xf32>
    %cst_29 = arith.constant 1.000000e+00 : f32
    %111 = vector.broadcast %cst_29 : f32 to vector<16x1xf32>
    %112 = arith.subf %110, %111 : vector<16x1xf32>
    %cst_30 = arith.constant 2.000000e+00 : f32
    %113 = vector.broadcast %cst_30 : f32 to vector<16x1xf32>
    %114 = arith.mulf %113, %89 : vector<16x1xf32>
    %115 = arith.mulf %114, %86 : vector<16x1xf32>
    %116 = vector.broadcast %112 : vector<16x1xf32> to vector<16x128xf32>
    %117 = arith.mulf %116, %104 : vector<16x128xf32>
    %118 = vector.broadcast %115 : vector<16x1xf32> to vector<16x128xf32>
    %119 = arith.mulf %118, %107 : vector<16x128xf32>
    %120 = arith.subf %117, %119 : vector<16x128xf32>
    %121 = vector.broadcast %115 : vector<16x1xf32> to vector<16x128xf32>
    %122 = arith.mulf %121, %104 : vector<16x128xf32>
    %123 = vector.broadcast %112 : vector<16x1xf32> to vector<16x128xf32>
    %124 = arith.mulf %123, %107 : vector<16x128xf32>
    %125 = arith.addf %122, %124 : vector<16x128xf32>
    %c16_i32 = arith.constant 16 : i32
    %126 = tpu.dynamic_rotate %120 by %c16_i32 dim 1 : vector<16x128xf32>, i32 -> vector<16x128xf32>
    %c16_i32_31 = arith.constant 16 : i32
    %127 = tpu.dynamic_rotate %125 by %c16_i32_31 dim 1 : vector<16x128xf32>, i32 -> vector<16x128xf32>
    %c16_i32_32 = arith.constant 16 : i32
    %128 = vector.broadcast %c16_i32_32 : i32 to vector<16x128xi32>
    %129 = arith.cmpi slt, %17, %128 : vector<16x128xi32>
    %130 = arith.select %129, %104, %126 : vector<16x128xi1>, vector<16x128xf32>
    %c16_i32_33 = arith.constant 16 : i32
    %131 = vector.broadcast %c16_i32_33 : i32 to vector<16x128xi32>
    %132 = arith.cmpi slt, %17, %131 : vector<16x128xi32>
    %133 = arith.select %132, %107, %127 : vector<16x128xi1>, vector<16x128xf32>
    %cst_34 = arith.constant 2.000000e+00 : f32
    %134 = vector.broadcast %cst_34 : f32 to vector<16x1xf32>
    %135 = arith.mulf %134, %112 : vector<16x1xf32>
    %136 = arith.mulf %135, %112 : vector<16x1xf32>
    %cst_35 = arith.constant 1.000000e+00 : f32
    %137 = vector.broadcast %cst_35 : f32 to vector<16x1xf32>
    %138 = arith.subf %136, %137 : vector<16x1xf32>
    %cst_36 = arith.constant 2.000000e+00 : f32
    %139 = vector.broadcast %cst_36 : f32 to vector<16x1xf32>
    %140 = arith.mulf %139, %115 : vector<16x1xf32>
    %141 = arith.mulf %140, %112 : vector<16x1xf32>
    %142 = vector.broadcast %138 : vector<16x1xf32> to vector<16x128xf32>
    %143 = arith.mulf %142, %130 : vector<16x128xf32>
    %144 = vector.broadcast %141 : vector<16x1xf32> to vector<16x128xf32>
    %145 = arith.mulf %144, %133 : vector<16x128xf32>
    %146 = arith.subf %143, %145 : vector<16x128xf32>
    %147 = vector.broadcast %141 : vector<16x1xf32> to vector<16x128xf32>
    %148 = arith.mulf %147, %130 : vector<16x128xf32>
    %149 = vector.broadcast %138 : vector<16x1xf32> to vector<16x128xf32>
    %150 = arith.mulf %149, %133 : vector<16x128xf32>
    %151 = arith.addf %148, %150 : vector<16x128xf32>
    %c32_i32 = arith.constant 32 : i32
    %152 = tpu.dynamic_rotate %146 by %c32_i32 dim 1 : vector<16x128xf32>, i32 -> vector<16x128xf32>
    %c32_i32_37 = arith.constant 32 : i32
    %153 = tpu.dynamic_rotate %151 by %c32_i32_37 dim 1 : vector<16x128xf32>, i32 -> vector<16x128xf32>
    %c32_i32_38 = arith.constant 32 : i32
    %154 = vector.broadcast %c32_i32_38 : i32 to vector<16x128xi32>
    %155 = arith.cmpi slt, %17, %154 : vector<16x128xi32>
    %156 = arith.select %155, %130, %152 : vector<16x128xi1>, vector<16x128xf32>
    %c32_i32_39 = arith.constant 32 : i32
    %157 = vector.broadcast %c32_i32_39 : i32 to vector<16x128xi32>
    %158 = arith.cmpi slt, %17, %157 : vector<16x128xi32>
    %159 = arith.select %158, %133, %153 : vector<16x128xi1>, vector<16x128xf32>
    %cst_40 = arith.constant 2.000000e+00 : f32
    %160 = vector.broadcast %cst_40 : f32 to vector<16x1xf32>
    %161 = arith.mulf %160, %138 : vector<16x1xf32>
    %162 = arith.mulf %161, %138 : vector<16x1xf32>
    %cst_41 = arith.constant 1.000000e+00 : f32
    %163 = vector.broadcast %cst_41 : f32 to vector<16x1xf32>
    %164 = arith.subf %162, %163 : vector<16x1xf32>
    %cst_42 = arith.constant 2.000000e+00 : f32
    %165 = vector.broadcast %cst_42 : f32 to vector<16x1xf32>
    %166 = arith.mulf %165, %141 : vector<16x1xf32>
    %167 = arith.mulf %166, %138 : vector<16x1xf32>
    %168 = vector.broadcast %164 : vector<16x1xf32> to vector<16x128xf32>
    %169 = arith.mulf %168, %156 : vector<16x128xf32>
    %170 = vector.broadcast %167 : vector<16x1xf32> to vector<16x128xf32>
    %171 = arith.mulf %170, %159 : vector<16x128xf32>
    %172 = arith.subf %169, %171 : vector<16x128xf32>
    %c64_i32 = arith.constant 64 : i32
    %173 = tpu.dynamic_rotate %172 by %c64_i32 dim 1 : vector<16x128xf32>, i32 -> vector<16x128xf32>
    %c64_i32_43 = arith.constant 64 : i32
    %174 = vector.broadcast %c64_i32_43 : i32 to vector<16x128xi32>
    %175 = arith.cmpi slt, %17, %174 : vector<16x128xi32>
    %176 = arith.select %175, %156, %173 : vector<16x128xi1>, vector<16x128xf32>
    %c0_44 = arith.constant 0 : index
    %c0_45 = arith.constant 0 : index
    %177 = vector.load %arg2[%c0_44, %c0_45] : memref<16x128xf32, #tpu.memory_space<vmem>>, vector<16x128xf32>
    tpu.vector_store %arg2[%c0_44, %c0_45], %176 {strides = array<i32>} : memref<16x128xf32, #tpu.memory_space<vmem>>, vector<16x128xf32>,
    return
  }
  func.func @transform_0(%arg0: i32) -> (i32, i32) {
    %c0_i32 = arith.constant 0 : i32
    %c0_i32_0 = arith.constant 0 : i32
    return %arg0, %c0_i32 : i32, i32
  }
  func.func @transform_1(%arg0: i32) -> (i32, i32) {
    %c0_i32 = arith.constant 0 : i32
    %c0_i32_0 = arith.constant 0 : i32
    return %arg0, %c0_i32 : i32, i32
  }
}

</mosaic_0001>

<bundles_post_ra>
// kernel: tpu_custom_call.1
= control target key start
LH: loop header
LB: loop body
LE: loop exit
PB: predicated region body
PF: predicated region fallthrough
CT: control target
= control target key end

     0   :  { %s511_s0 = inlined_call_operand.vmem [shape: f32[16,1], index: 0, kind: input, shape index: {}]   ;;  %s512_s1 = inlined_call_operand.hbm [shape: f32[16,128], index: 1, kind: output, shape index: {}]  }
   0x1   :  { %v9_v0 = vld [vmem:[%s511_s0] sm:$0xff]  ;;  %v10_v1 = vld [vmem:[%s511_s0 + $0x8] sm:$0xff] }
   0x2   :  { %6 = vsyncpa [#allocation3], 0  ;;  %v460_v2 = vmov 0   ;;  %v11_v3 = vmul.f32 2.0, %v9_v0  ;;  %v12_v4 = vmul.f32 2.0, %v10_v1  ;;  %v42_v52 = vlaneseq  ;;  %s461_s0 = smov 2  }
   0x3   :  { %430 = vset.pattern.permute.xlu0 %v460_v2  ;;  %431 = vset.pattern.permute.xlu1 %v460_v2  ;;  %s462_s10 = smov 4   ;;  %s463_s11 = smov 8  }
   0x4   :  { %v14_v5 = vmul.f32 0.06666667, %v11_v3  ;;  %v15_v6 = vmul.f32 0.06666667, %v12_v4  ;;  %v485_v55 = vand.u32 127, %v42_v52  ;;  %s464_s12 = smov 16  }
   0x5   :  { %s465_s13 = smov 32   ;;  %s466_s14 = smov 64  }
   0x6   :  { %v405_v7 = vadd.f32 -1.0, %v14_v5  ;;  %v406_v8 = vadd.f32 -1.0, %v15_v6  ;;  %vm44_vm4 = vcmp.eq.s32.totalorder %v485_v55, 0  ;;  %vm119_vm5 = vcmp.lt.s32.totalorder %v485_v55, 2  ;;  %s467_s15 = smov [#allocation2]  }
   0x7   :  { %vm174_vm6 = vcmp.lt.s32.totalorder %v485_v55, 4  ;;  %vm229_vm7 = vcmp.lt.s32.totalorder %v485_v55, 8  ;;  %vm284_vm8 = vcmp.lt.s32.totalorder %v485_v55, 16  ;;  %vm339_vm9 = vcmp.lt.s32.totalorder %v485_v55, 32  ;;  %s394_s16 = sshll.u32 %s467_s15, 4  ;;  %s395_s16 = int_to_ptr.vmem [resolvable:$true] %s394_s16 }
   0x8   :  { %v407_v9 = vclamps-f32 %v405_v7, 1.0  ;;  %v408_v10 = vclamps-f32 %v406_v8, 1.0  ;;  %vm384_vm10 = vcmp.lt.s32.totalorder %v485_v55, 64  ;;  %s436_s17 = scalar_lea.vmem %s395_s16, 256  ;;  %p441_p1 = scmp.lt.s32.totalorder %s395_s16, %s395_s16 }
   0x9   :  { %p437_p0 = scmp.ne.s32.totalorder %s395_s16, %s436_s17  ;;  %p442_p2 = scmp.lt.s32.totalorder %s436_s17, %s436_s17 }
   0xa   :  { %47 = vperm.xlu0 %430, %v407_v9   ;;  %v70_v11 = vmul.f32 2.0, %v408_v10  ;;  %v69_v12 = vmul.f32 2.0, %v407_v9  ;;  %v22_v13 = vmul.f32 %v407_v9, %v407_v9  ;;  %v23_v14 = vmul.f32 %v408_v10, %v408_v10 }
   0xb   :  { %p443_p3 = por %p442_p2, %p441_p1 }
   0xc   :  { %v72_v15 = vmul.f32 %v408_v10, %v70_v11  ;;  %v71_v16 = vmul.f32 %v407_v9, %v69_v12  ;;  %v24_v17 = vsub.f32 1.0, %v22_v13  ;;  %v25_v18 = vsub.f32 1.0, %v23_v14 }
   0xd   :  { %p444_p4 = pnand %p443_p3, %p437_p0 }
   0xe   :  { %52 = vperm.xlu0 %430, %v408_v10   ;;  %v410_v19 = vadd.f32 -1.0, %v72_v15  ;;  %v409_v20 = vadd.f32 -1.0, %v71_v16  ;;  %v26_v21 = vmax.f32 %v24_v17, 0.0  ;;  %v27_v22 = vmax.f32 %v25_v18, 0.0 }
  0x10   :  { %86 = vperm.xlu1 %431, %v410_v19   ;;  %432 = vrsqrt.f32 %v26_v21  ;;  %vm30_vm0 = vcmp.eq.f32.partialorder %v26_v21, inf  ;;  %vm32_vm1 = vcmp.eq.f32.partialorder %v26_v21, 0.0  ;;  %v33_v24 = vand.u32 2147483648, %v26_v21 }
  0x11   :  { %434 = vrsqrt.f32 %v27_v22  ;;  %vm37_vm2 = vcmp.eq.f32.partialorder %v27_v22, inf  ;;  %v40_v27 = vand.u32 2147483648, %v27_v22  ;;  %v124_v28 = vmul.f32 2.0, %v409_v20 }
  0x12   :  { %81 = vperm.xlu0 %430, %v409_v20   ;;  %vm39_vm3 = vcmp.eq.f32.partialorder %v27_v22, 0.0  ;;  %v125_v36 = vmul.f32 2.0, %v410_v19 }
  0x13   :  { %v126_v35 = vmul.f32 %v409_v20, %v124_v28 }
  0x14   :  { %v127_v41 = vmul.f32 %v410_v19, %v125_v36 }
  0x15   :  { %v411_v40 = vadd.f32 -1.0, %v126_v35 }
  0x16   :  { %v412_v43 = vadd.f32 -1.0, %v127_v41 }
  0x17   :  { %v179_v62 = vmul.f32 2.0, %v411_v40 }
  0x19   :  { %v181_v6 = vmul.f32 %v411_v40, %v179_v62 }
  0x1a   :  { %v433_v23 = vpop.eup %432 }
  0x1b   :  { %v435_v25 = vpop.eup %434  ;;  %v29_v26 = vmul.f32 %v433_v23, %v26_v21  ;;  %v413_v15 = vadd.f32 -1.0, %v181_v6 }
  0x1c   :  { %v36_v29 = vmul.f32 %v435_v25, %v27_v22 }
  0x1d   :  { %v31_v30 = vsel %vm30_vm0, %v26_v21, %v29_v26 }
  0x1e   :  { %v34_v31 = vsel %vm32_vm1, %v33_v24, %v31_v30  ;;  %v38_v32 = vsel %vm37_vm2, %v27_v22, %v36_v29 }
  0x1f   :  { %59 = vperm.xlu1 %431, %v34_v31   ;;  %v75_v33 = vmul.f32 2.0, %v34_v31  ;;  %v41_v34 = vsel %vm39_vm3, %v40_v27, %v38_v32  ;;  %v234_v32 = vmul.f32 2.0, %v413_v15 }
  0x20   :  { %v76_v37 = vmul.f32 2.0, %v41_v34 }
  0x21   :  { %v77_v38 = vmul.f32 %v407_v9, %v75_v33 }
  0x22   :  { %v78_v39 = vmul.f32 %v408_v10, %v76_v37  ;;  %v180_v10 = vmul.f32 2.0, %v412_v43 }
  0x23   :  { %64 = vperm.xlu1 %431, %v41_v34   ;;  %93 = vperm.xlu0 %430, %v77_v38   ;;  %v130_v42 = vmul.f32 2.0, %v77_v38 }
  0x24   :  { %v131_v45 = vmul.f32 2.0, %v78_v39  ;;  %v182_v16 = vmul.f32 %v412_v43, %v180_v10 }
  0x25   :  { %v132_v44 = vmul.f32 %v409_v20, %v130_v42 }
  0x26   :  { %v133_v46 = vmul.f32 %v410_v19, %v131_v45  ;;  %v414_v20 = vadd.f32 -1.0, %v182_v16 }
  0x27   :  { %98 = vperm.xlu1 %431, %v78_v39   ;;  %136 = vperm.xlu0 %430, %v411_v40   ;;  %v185_v47 = vmul.f32 2.0, %v132_v44 }
  0x28   :  { %v186_v49 = vmul.f32 2.0, %v133_v46 }
  0x29   :  { %v187_v48 = vmul.f32 %v411_v40, %v185_v47  ;;  %v236_v40 = vmul.f32 %v413_v15, %v234_v32 }
  0x2a   :  { %v188_v50 = vmul.f32 %v412_v43, %v186_v49 }
  0x2b   :  { %141 = vperm.xlu1 %431, %v412_v43   ;;  %148 = vperm.xlu0 %430, %v132_v44   ;;  %v240_v17 = vmul.f32 2.0, %v187_v48  ;;  %v235_v44 = vmul.f32 2.0, %v414_v20  ;;  %v415_v49 = vadd.f32 -1.0, %v236_v40 }
  0x2c   :  { %v241_v21 = vmul.f32 2.0, %v188_v50 }
  0x2d   :  { %v242_v19 = vmul.f32 %v413_v15, %v240_v17 }
  0x2e   :  { %v243_v22 = vmul.f32 %v414_v20, %v241_v21 }
  0x2f   :  { %153 = vperm.xlu1 %431, %v133_v46  }
  0x89   :  { %v48_v51 = vpop.permute.xlu0 %47 }
  0x8a   :  { %v55_v58 = vsel %vm44_vm4, 1.0, %v48_v51  ;;  %v295_v51 = vmul.f32 2.0, %v242_v19 }
  0x8d   :  { %v53_v53 = vpop.permute.xlu0 %52 }
  0x8e   :  { %v56_v1 = vsel %vm44_vm4, 1.0, %v53_v53  ;;  %v297_v53 = vmul.f32 %v415_v49, %v295_v51 }
  0x8f   :  { %v87_v54 = vpop.permute.xlu1 %86 }
  0x90   :  { %v90_v7 = vmul.f32 %v87_v54, %v56_v1 }
  0x91   :  { %v82_v56 = vpop.permute.xlu0 %81 }
  0x92   :  { %v89_v63 = vmul.f32 %v82_v56, %v55_v58 }
  0x9e   :  { %v60_v57 = vpop.permute.xlu1 %59 }
  0x9f   :  { %v67_v59 = vsel %vm44_vm4, 0.0, %v60_v57 }
  0xa0   :  { %v107_v8 = vmul.f32 %v82_v56, %v67_v59  ;;  %v296_v56 = vmul.f32 2.0, %v243_v22 }
  0xa2   :  { %v65_v60 = vpop.permute.xlu1 %64  ;;  %v94_v61 = vpop.permute.xlu0 %93 }
  0xa3   :  { %v101_v0 = vmul.f32 %v94_v61, %v67_v59  ;;  %v105_v3 = vmul.f32 %v94_v61, %v55_v58  ;;  %v68_v4 = vsel %vm44_vm4, 0.0, %v65_v60 }
  0xa4   :  { %v108_v14 = vmul.f32 %v87_v54, %v68_v4 }
  0xa5   :  { %v103_v2 = vsub.f32 %v89_v63, %v101_v0  ;;  %v109_v11 = vadd.f32 %v107_v8, %v105_v3  ;;  %v289_v3 = vmul.f32 2.0, %v415_v49 }
  0xa6   :  { %v99_v5 = vpop.permute.xlu1 %98  ;;  %v137_v23 = vpop.permute.xlu0 %136 }
  0xa7   :  { %v102_v9 = vmul.f32 %v99_v5, %v68_v4  ;;  %111 = vrot.lane.b32.xlu0 %v103_v2, %s461_s0  ;;  %v106_v13 = vmul.f32 %v99_v5, %v56_v1 }
  0xa9   :  { %v104_v12 = vsub.f32 %v90_v7, %v102_v9  ;;  %v110_v18 = vadd.f32 %v108_v14, %v106_v13 }
  0xaa   :  { %v142_v24 = vpop.permute.xlu1 %141  ;;  %v149_v25 = vpop.permute.xlu0 %148 }
  0xab   :  { %113 = vrot.lane.b32.xlu1 %v104_v12, %s461_s0  ;;  %115 = vrot.lane.b32.xlu0 %v109_v11, %s461_s0  ;;  %v291_v11 = vmul.f32 %v415_v49, %v289_v3 }
  0xae   :  { %v154_v26 = vpop.permute.xlu1 %153 }
  0xaf   :  { %117 = vrot.lane.b32.xlu1 %v110_v18, %s461_s0  ;;  %191 = vperm.xlu0 %430, %v413_v15  }
  0xb3   :  { %196 = vperm.xlu1 %431, %v414_v20   ;;  %203 = vperm.xlu0 %430, %v187_v48  }
  0xb7   :  { %208 = vperm.xlu1 %431, %v188_v50   ;;  %v237_v50 = vmul.f32 %v414_v20, %v235_v44  ;;  %v417_v20 = vadd.f32 -1.0, %v291_v11 }
  0xb9   :  { %v416_v54 = vadd.f32 -1.0, %v237_v50 }
  0xbb   :  { %v298_v57 = vmul.f32 %v416_v54, %v296_v56  ;;  %v290_v15 = vmul.f32 2.0, %v416_v54 }
  0xbd   :  { %v292_v21 = vmul.f32 %v416_v54, %v290_v15 }
 0x119   :  { %v112_v27 = vpop.permute.xlu0 %111 }
 0x11a   :  { %v120_v28 = vsel %vm119_vm5, %v55_v58, %v112_v27 }
 0x11b   :  { %v144_v33 = vmul.f32 %v137_v23, %v120_v28  ;;  %v160_v41 = vmul.f32 %v149_v25, %v120_v28 }
 0x11d   :  { %v114_v29 = vpop.permute.xlu1 %113  ;;  %v116_v30 = vpop.permute.xlu0 %115 }
 0x11e   :  { %v122_v31 = vsel %vm119_vm5, %v67_v59, %v116_v30  ;;  %v121_v35 = vsel %vm119_vm5, %v56_v1, %v114_v29 }
 0x11f   :  { %v156_v34 = vmul.f32 %v149_v25, %v122_v31  ;;  %v162_v36 = vmul.f32 %v137_v23, %v122_v31  ;;  %v145_v42 = vmul.f32 %v142_v24, %v121_v35  ;;  %v161_v48 = vmul.f32 %v154_v26, %v121_v35 }
 0x120   :  { %v418_v25 = vadd.f32 -1.0, %v292_v21 }
 0x121   :  { %v118_v37 = vpop.permute.xlu1 %117  ;;  %v158_v38 = vsub.f32 %v144_v33, %v156_v34  ;;  %v164_v47 = vadd.f32 %v162_v36, %v160_v41 }
 0x122   :  { %v123_v39 = vsel %vm119_vm5, %v68_v4, %v118_v37  ;;  %v344_v37 = vmul.f32 2.0, %v417_v20 }
 0x123   :  { %v157_v43 = vmul.f32 %v154_v26, %v123_v39  ;;  %166 = vrot.lane.b32.xlu0 %v158_v38, %s462_s10  ;;  %v163_v45 = vmul.f32 %v142_v24, %v123_v39  ;;  %v351_v26 = vmul.f32 2.0, %v298_v57 }
 0x125   :  { %v159_v46 = vsub.f32 %v145_v42, %v157_v43  ;;  %v165_v52 = vadd.f32 %v163_v45, %v161_v48  ;;  %v353_v27 = vmul.f32 %v418_v25, %v351_v26  ;;  %v346_v45 = vmul.f32 %v417_v20, %v344_v37 }
 0x127   :  { %168 = vrot.lane.b32.xlu1 %v159_v46, %s462_s10  ;;  %170 = vrot.lane.b32.xlu0 %v164_v47, %s462_s10 }
 0x12b   :  { %172 = vrot.lane.b32.xlu1 %v165_v52, %s462_s10  ;;  %246 = vperm.xlu0 %430, %v415_v49   ;;  %v345_v49 = vmul.f32 2.0, %v418_v25 }
 0x12d   :  { %v347_v56 = vmul.f32 %v418_v25, %v345_v49 }
 0x12e   :  { %v192_v58 = vpop.permute.xlu0 %191 }
 0x12f   :  { %251 = vperm.xlu1 %431, %v416_v54   ;;  %258 = vperm.xlu0 %430, %v242_v19   ;;  %v419_v54 = vadd.f32 -1.0, %v346_v45 }
 0x132   :  { %v197_v59 = vpop.permute.xlu1 %196  ;;  %v204_v60 = vpop.permute.xlu0 %203 }
 0x133   :  { %263 = vperm.xlu1 %431, %v243_v22   ;;  %v350_v22 = vmul.f32 2.0, %v297_v53 }
 0x135   :  { %v352_v24 = vmul.f32 %v417_v20, %v350_v22 }
 0x136   :  { %v209_v61 = vpop.permute.xlu1 %208 }
 0x195   :  { %v167_v62 = vpop.permute.xlu0 %166 }
 0x196   :  { %v175_v63 = vsel %vm174_vm6, %v120_v28, %v167_v62 }
 0x197   :  { %v199_v4 = vmul.f32 %v192_v58, %v175_v63  ;;  %v215_v12 = vmul.f32 %v204_v60, %v175_v63 }
 0x199   :  { %v169_v0 = vpop.permute.xlu1 %168  ;;  %v171_v1 = vpop.permute.xlu0 %170 }
 0x19a   :  { %v177_v2 = vsel %vm174_vm6, %v122_v31, %v171_v1  ;;  %v176_v6 = vsel %vm174_vm6, %v121_v35, %v169_v0 }
 0x19b   :  { %v211_v5 = vmul.f32 %v204_v60, %v177_v2  ;;  %v217_v7 = vmul.f32 %v192_v58, %v177_v2  ;;  %v200_v13 = vmul.f32 %v197_v59, %v176_v6  ;;  %v216_v19 = vmul.f32 %v209_v61, %v176_v6 }
 0x19c   :  { %v420_v58 = vadd.f32 -1.0, %v347_v56 }
 0x19d   :  { %v173_v8 = vpop.permute.xlu1 %172  ;;  %v213_v9 = vsub.f32 %v199_v4, %v211_v5  ;;  %v219_v18 = vadd.f32 %v217_v7, %v215_v12 }
 0x19e   :  { %v178_v10 = vsel %vm174_vm6, %v123_v39, %v173_v8 }
 0x19f   :  { %v212_v14 = vmul.f32 %v209_v61, %v178_v10  ;;  %221 = vrot.lane.b32.xlu0 %v213_v9, %s463_s11  ;;  %v218_v16 = vmul.f32 %v197_v59, %v178_v10 }
 0x1a1   :  { %v214_v17 = vsub.f32 %v200_v13, %v212_v14  ;;  %v220_v23 = vadd.f32 %v218_v16, %v216_v19 }
 0x1a3   :  { %223 = vrot.lane.b32.xlu1 %v214_v17, %s463_s11  ;;  %225 = vrot.lane.b32.xlu0 %v219_v18, %s463_s11 }
 0x1a7   :  { %227 = vrot.lane.b32.xlu1 %v220_v23, %s463_s11  ;;  %301 = vperm.xlu0 %430, %v417_v20  }
 0x1aa   :  { %v247_v28 = vpop.permute.xlu0 %246 }
 0x1ab   :  { %306 = vperm.xlu1 %431, %v418_v25   ;;  %313 = vperm.xlu0 %430, %v297_v53  }
 0x1ae   :  { %v252_v29 = vpop.permute.xlu1 %251  ;;  %v259_v30 = vpop.permute.xlu0 %258 }
 0x1af   :  { %318 = vperm.xlu1 %431, %v298_v57  }
 0x1b2   :  { %v264_v31 = vpop.permute.xlu1 %263 }
 0x211   :  { %v222_v32 = vpop.permute.xlu0 %221 }
 0x212   :  { %v230_v33 = vsel %vm229_vm7, %v175_v63, %v222_v32 }
 0x213   :  { %v254_v38 = vmul.f32 %v247_v28, %v230_v33  ;;  %v270_v46 = vmul.f32 %v259_v30, %v230_v33 }
 0x215   :  { %v224_v34 = vpop.permute.xlu1 %223  ;;  %v226_v35 = vpop.permute.xlu0 %225 }
 0x216   :  { %v232_v36 = vsel %vm229_vm7, %v177_v2, %v226_v35  ;;  %v231_v40 = vsel %vm229_vm7, %v176_v6, %v224_v34 }
 0x217   :  { %v266_v39 = vmul.f32 %v259_v30, %v232_v36  ;;  %v272_v41 = vmul.f32 %v247_v28, %v232_v36  ;;  %v255_v47 = vmul.f32 %v252_v29, %v231_v40  ;;  %v271_v53 = vmul.f32 %v264_v31, %v231_v40 }
 0x219   :  { %v228_v42 = vpop.permute.xlu1 %227  ;;  %v268_v43 = vsub.f32 %v254_v38, %v266_v39  ;;  %v274_v52 = vadd.f32 %v272_v41, %v270_v46 }
 0x21a   :  { %v233_v44 = vsel %vm229_vm7, %v178_v10, %v228_v42 }
 0x21b   :  { %v267_v48 = vmul.f32 %v264_v31, %v233_v44  ;;  %276 = vrot.lane.b32.xlu0 %v268_v43, %s464_s12  ;;  %v273_v50 = vmul.f32 %v252_v29, %v233_v44 }
 0x21d   :  { %v269_v51 = vsub.f32 %v255_v47, %v267_v48  ;;  %v275_v57 = vadd.f32 %v273_v50, %v271_v53 }
 0x21f   :  { %278 = vrot.lane.b32.xlu1 %v269_v51, %s464_s12  ;;  %280 = vrot.lane.b32.xlu0 %v274_v52, %s464_s12 }
 0x223   :  { %282 = vrot.lane.b32.xlu1 %v275_v57, %s464_s12  ;;  %356 = vperm.xlu0 %430, %v419_v54  }
 0x226   :  { %v302_v59 = vpop.permute.xlu0 %301 }
 0x227   :  { %361 = vperm.xlu1 %431, %v420_v58   ;;  %368 = vperm.xlu0 %430, %v352_v24  }
 0x22a   :  { %v307_v60 = vpop.permute.xlu1 %306  ;;  %v314_v61 = vpop.permute.xlu0 %313 }
 0x22b   :  { %373 = vperm.xlu1 %431, %v353_v27  }
 0x22e   :  { %v319_v62 = vpop.permute.xlu1 %318 }
 0x28d   :  { %v277_v63 = vpop.permute.xlu0 %276 }
 0x28e   :  { %v285_v0 = vsel %vm284_vm8, %v230_v33, %v277_v63 }
 0x28f   :  { %v309_v4 = vmul.f32 %v302_v59, %v285_v0  ;;  %v325_v11 = vmul.f32 %v314_v61, %v285_v0 }
 0x291   :  { %v279_v1 = vpop.permute.xlu1 %278  ;;  %v281_v2 = vpop.permute.xlu0 %280 }
 0x292   :  { %v287_v3 = vsel %vm284_vm8, %v232_v36, %v281_v2  ;;  %v286_v6 = vsel %vm284_vm8, %v231_v40, %v279_v1 }
 0x293   :  { %v321_v5 = vmul.f32 %v314_v61, %v287_v3  ;;  %v327_v7 = vmul.f32 %v302_v59, %v287_v3  ;;  %v310_v12 = vmul.f32 %v307_v60, %v286_v6  ;;  %v326_v17 = vmul.f32 %v319_v62, %v286_v6 }
 0x295   :  { %v283_v8 = vpop.permute.xlu1 %282  ;;  %v323_v9 = vsub.f32 %v309_v4, %v321_v5  ;;  %v329_v16 = vadd.f32 %v327_v7, %v325_v11 }
 0x296   :  { %v288_v10 = vsel %vm284_vm8, %v233_v44, %v283_v8 }
 0x297   :  { %v322_v13 = vmul.f32 %v319_v62, %v288_v10  ;;  %331 = vrot.lane.b32.xlu0 %v323_v9, %s465_s13  ;;  %v328_v14 = vmul.f32 %v307_v60, %v288_v10 }
 0x299   :  { %v324_v15 = vsub.f32 %v310_v12, %v322_v13  ;;  %v330_v18 = vadd.f32 %v328_v14, %v326_v17 }
 0x29b   :  { %333 = vrot.lane.b32.xlu1 %v324_v15, %s465_s13  ;;  %335 = vrot.lane.b32.xlu0 %v329_v16, %s465_s13 }
 0x29f   :  { %337 = vrot.lane.b32.xlu1 %v330_v18, %s465_s13 }
 0x2a2   :  { %v357_v19 = vpop.permute.xlu0 %356 }
 0x2a6   :  { %v362_v20 = vpop.permute.xlu1 %361  ;;  %v369_v21 = vpop.permute.xlu0 %368 }
 0x2aa   :  { %v374_v22 = vpop.permute.xlu1 %373 }
 0x309   :  { %v332_v23 = vpop.permute.xlu0 %331 }
 0x30a   :  { %v340_v24 = vsel %vm339_vm9, %v285_v0, %v332_v23 }
 0x30b   :  { %v364_v28 = vmul.f32 %v357_v19, %v340_v24 }
 0x30d   :  { %v334_v25 = vpop.permute.xlu1 %333  ;;  %v336_v26 = vpop.permute.xlu0 %335 }
 0x30e   :  { %v342_v27 = vsel %vm339_vm9, %v287_v3, %v336_v26  ;;  %v341_v30 = vsel %vm339_vm9, %v286_v6, %v334_v25 }
 0x30f   :  { %v376_v29 = vmul.f32 %v369_v21, %v342_v27  ;;  %v365_v34 = vmul.f32 %v362_v20, %v341_v30 }
 0x311   :  { %v338_v31 = vpop.permute.xlu1 %337  ;;  %v378_v32 = vsub.f32 %v364_v28, %v376_v29 }
 0x312   :  { %v343_v33 = vsel %vm339_vm9, %v288_v10, %v338_v31 }
 0x313   :  { %v377_v35 = vmul.f32 %v374_v22, %v343_v33  ;;  %380 = vrot.lane.b32.xlu0 %v378_v32, %s466_s14 }
 0x315   :  { %v379_v36 = vsub.f32 %v365_v34, %v377_v35 }
 0x317   :  { %382 = vrot.lane.b32.xlu1 %v379_v36, %s466_s14 }
 0x385   :  { %v381_v37 = vpop.permute.xlu0 %380 }
 0x386   :  { %v385_v38 = vsel %vm384_vm10, %v340_v24, %v381_v37 }
 0x387   :  { %387 = vst [vmem:[#allocation2] sm:$0xff] %v385_v38 }
 0x389   :  { %v383_v39 = vpop.permute.xlu1 %382 }
 0x38a   :  { %v386_v40 = vsel %vm384_vm10, %v341_v30, %v383_v39 }
 0x38b   :  { %388 = vst [vmem:[#allocation2 + $0x8] sm:$0xff] %v386_v40 }
 0x38c   :  { %447 = shalt.err (!%p444_p4)
}
 0x38d   :  { %s448_s20 = scalar_lea.hbm %s512_s1, 256 }
 0x38e   :  { %p449_p5 = scmp.ne.s32.totalorder %s512_s1, %s448_s20  ;;  %p452_p6 = scmp.lt.u32.totalorder %s448_s20, %s512_s1 }
 0x390   :  { %p454_p7 = pnand %p452_p6, %p449_p5 }
 0x392   :  { %457 = shalt.err (!%p454_p7)
}
 0x393   :  { %s468_s25 = smov 128  }
 0x394   :  { %400 = dma.vmem_to_hbm [thread:$0]  %s395_s16, 256, %s512_s1, [#allocation3], %s468_s25, %s468_s25, %s463_s11  }
 0x395   :  { %458 = dma.done.wait [#allocation3], 256  }
 0x396   :  { %459 = vsyncadd [#allocation3], 4294967040 }
 0x397   :  { %404 = vsyncpa [#allocation3], 1 }

</bundles_post_ra>
